<compile_context>
chip_gen: v7x
topology: tpu7x:2x2x1
jax: 0.10.0
libtpu: 0.0.40
codegen_flags: <defaults>
</compile_context>

<pallas_src>
import math
from functools import partial

import jax
import jax.numpy as jnp
from jax.experimental import pallas as pl
from jax.experimental.pallas import tpu as pltpu


def _round_up(x, m):
    return -(-x // m) * m


def _colorpeak_kernel(d_ref, out_ref, *, muh, inv_two_sig2, d1, d2):
    d = d_ref[...]                                        # (tn, D1+D2), f32
    # Single EUP pass over the fused (D1+D2)-lane tile.
    g = jnp.exp(-(d * d) * inv_two_sig2)                  # (tn, D1+D2)
    rows = g.shape[0]
    g0 = muh * g[:, :d1]                                  # (tn, D1), muh folded
    g1 = g[:, d1:d1 + d2]                                 # (tn, D2)
    # Lane-dense outer product: out[n, i*D2 + j] = g0[n, i] * g1[n, j].
    # Built with static slices / lane broadcasts / lane concat + one dense
    # multiply (no reshape, no repeat, no gather -> robust Mosaic lowering).
    g0e = jnp.concatenate(
        [jnp.broadcast_to(g0[:, i:i + 1], (rows, d2)) for i in range(d1)],
        axis=-1,
    )                                                     # (tn, D1*D2)
    g1e = jnp.concatenate([g1] * d1, axis=-1)             # (tn, D1*D2)
    out_ref[...] = (g0e * g1e).astype(out_ref.dtype)


def colorpeak(diff0, diff1, muh, sigmah, *, tn=4096, out_dtype=jnp.float32,
              min_pallas_rows=8):
    """diff0: (..., D1), diff1: (..., D2) sharing leading dims -> (..., D1, D2)."""
    lead = diff0.shape[:-1]
    D1 = diff0.shape[-1]
    D2 = diff1.shape[-1]
    assert diff1.shape[:-1] == lead, "Diff[0]/Diff[1] must share leading dims"
    N = math.prod(lead) if lead else 1
    D = D1 * D2

    muh = float(muh)
    inv_two_sig2 = 1.0 / (2.0 * float(sigmah) * float(sigmah))

    # Tiny problems: launch + pipeline overhead dwarfs DMA time; let XLA fuse it.
    if N < min_pallas_rows:
        h0 = muh * jnp.exp(-(diff0.astype(jnp.float32) ** 2) * inv_two_sig2)
        h1 = jnp.exp(-(diff1.astype(jnp.float32) ** 2) * inv_two_sig2)
        return (h0[..., :, None] * h1[..., None, :]).astype(out_dtype)

    # Fused input: one DMA stream, half the lane-padded input VMEM, one exp pass.
    # (Costs one extra pass over the *inputs* in the wrapper, which is small
    # relative to the D2x larger output writeback.)
    d0f = diff0.reshape(N, D1).astype(jnp.float32)
    d1f = diff1.reshape(N, D2).astype(jnp.float32)
    dcat = jnp.concatenate([d0f, d1f], axis=-1)           # (N, D1+D2)

    # --- Row-tile selection -------------------------------------------------
    # Multiple of 8 sublanes; keep >= 4 grid steps when N allows (2 pipelined
    # steps per TensorCore on v7x's two cores).
    MIN_STEPS = 4
    tn = max(8, _round_up(min(int(tn), pl.cdiv(N, MIN_STEPS)), 8))

    # --- VMEM budget (lane padding included) ---------------------------------
    # Input buffer:  tn x roundup(D1+D2, 128) f32 ; output: tn x roundup(D,128)
    # in out_dtype; both double-buffered by the Pallas pipeline.
    out_itemsize = jnp.dtype(out_dtype).itemsize

    def _footprint(t):
        in_b = t * _round_up(D1 + D2, 128) * 4
        out_b = t * _round_up(D, 128) * out_itemsize
        return 2 * (in_b + out_b)

    while tn > 8 and _footprint(tn) > (40 << 20):
        tn = max(8, _round_up(tn // 2, 8))
    vmem_limit = int(min(max(_footprint(tn) + (4 << 20), 16 << 20), 48 << 20))

    grid_n = pl.cdiv(N, tn)                                # ragged edge masked by Pallas

    kernel = partial(
        _colorpeak_kernel,
        muh=muh,
        inv_two_sig2=inv_two_sig2,
        d1=D1,
        d2=D2,
    )

    out = pl.pallas_call(
        kernel,
        out_shape=jax.ShapeDtypeStruct((N, D), out_dtype),
        grid_spec=pl.GridSpec(
            grid=(grid_n,),
            in_specs=[
                pl.BlockSpec((tn, D1 + D2), lambda i: (i, 0)),   # fused Diff tile
            ],
            out_specs=pl.BlockSpec((tn, D), lambda i: (i, 0)),   # lane-dense tile
        ),
        compiler_params=pltpu.CompilerParams(
            dimension_semantics=("parallel",),
            vmem_limit_bytes=vmem_limit,
        ),
    )(dcat)

    return out.reshape(*lead, D1, D2)


if __name__ == "__main__":
    # Deterministic parameter init (matches ColorPeak.__init__ defaults).
    muh = 0.2
    sigmah = 0.5

    key = jax.random.PRNGKey(0)
    k0, k1, k2, k3 = jax.random.split(key, 4)

    gauss = lambda x: jnp.exp(-x ** 2 / (2.0 * sigmah ** 2))

    # Case 1: lane-friendly color dim (D1 = D2 = 16); N = 2*4*16 = 128 rows,
    # which gives 4 grid steps at the auto-selected tile size.
    B, Y, X, Dc = 2, 4, 16, 16
    diff0 = jax.random.normal(k0, (B, Y, X, Dc), dtype=jnp.float32)
    diff1 = jax.random.normal(k1, (B, Y, X, Dc), dtype=jnp.float32)
    H = colorpeak(diff0, diff1, muh, sigmah)
    jax.block_until_ready(H)
    ref = muh * gauss(diff0)[..., :, None] * gauss(diff1)[..., None, :]
    assert H.shape == (B, Y, X, Dc, Dc)
    assert jnp.allclose(H, ref, atol=1e-5, rtol=1e-5)

    # Case 2: ragged row count (N = 15) and odd color dim (2*Nc+1 = 7):
    # exercises the Pallas-masked partial edge block (no wrapper pad/slice)
    # and a non-128-multiple output lane width.
    diff0b = jax.random.normal(k2, (1, 3, 5, 7), dtype=jnp.float32)
    diff1b = jax.random.normal(k3, (1, 3, 5, 7), dtype=jnp.float32)
    Hb = colorpeak(diff0b, diff1b, muh, sigmah)
    jax.block_until_ready(Hb)
    refb = muh * gauss(diff0b)[..., :, None] * gauss(diff1b)[..., None, :]
    assert Hb.shape == (1, 3, 5, 7, 7)
    assert jnp.allclose(Hb, refb, atol=1e-5, rtol=1e-5)

    print("KERNEL_OK")
</pallas_src>

<mosaic_0001>
module attributes {stable_mosaic.version = 11 : i64} {
  func.func @_colorpeak_kernel(%arg0: i32, %arg1: memref<32x32xf32, #tpu.memory_space<vmem>>, %arg2: memref<32x256xf32, #tpu.memory_space<vmem>>) attributes {dimension_semantics = [#tpu.dimension_semantics<parallel>], iteration_bounds = array<i64: 4>, scalar_prefetch = 0 : i64, scratch_operands = 0 : i64, tpu.core_type = #tpu.core_type<tc>, window_params = [{transform_indices = @transform_0, window_bounds = array<i64: 32, 32>}, {transform_indices = @transform_1, window_bounds = array<i64: 32, 256>}]} {
    %c0 = arith.constant 0 : index
    %c0_0 = arith.constant 0 : index
    %0 = vector.load %arg1[%c0, %c0_0] : memref<32x32xf32, #tpu.memory_space<vmem>>, vector<32x32xf32>
    %1 = arith.mulf %0, %0 : vector<32x32xf32>
    %cst = arith.constant 0.000000e+00 : f32
    %2 = vector.broadcast %cst : f32 to vector<32x32xf32>
    %3 = arith.subf %2, %1 : vector<32x32xf32>
    %cst_1 = arith.constant 2.000000e+00 : f32
    %4 = vector.broadcast %cst_1 : f32 to vector<32x32xf32>
    %5 = arith.mulf %3, %4 : vector<32x32xf32>
    %6 = math.exp %5 : vector<32x32xf32>
    %7 = vector.extract_strided_slice %6 {offsets = [0, 0], sizes = [32, 16], strides = [1, 1]} : vector<32x32xf32> to vector<32x16xf32>
    %cst_2 = arith.constant 2.000000e-01 : f32
    %8 = vector.broadcast %cst_2 : f32 to vector<32x16xf32>
    %9 = arith.mulf %8, %7 : vector<32x16xf32>
    %10 = vector.extract_strided_slice %6 {offsets = [0, 16], sizes = [32, 16], strides = [1, 1]} : vector<32x32xf32> to vector<32x16xf32>
    %11 = vector.extract_strided_slice %9 {offsets = [0, 0], sizes = [32, 1], strides = [1, 1]} : vector<32x16xf32> to vector<32x1xf32>
    %12 = vector.shape_cast %11 : vector<32x1xf32> to vector<32x1xf32>
    %13 = vector.broadcast %12 : vector<32x1xf32> to vector<32x16xf32>
    %14 = vector.extract_strided_slice %9 {offsets = [0, 1], sizes = [32, 1], strides = [1, 1]} : vector<32x16xf32> to vector<32x1xf32>
    %15 = vector.shape_cast %14 : vector<32x1xf32> to vector<32x1xf32>
    %16 = vector.broadcast %15 : vector<32x1xf32> to vector<32x16xf32>
    %17 = vector.extract_strided_slice %9 {offsets = [0, 2], sizes = [32, 1], strides = [1, 1]} : vector<32x16xf32> to vector<32x1xf32>
    %18 = vector.shape_cast %17 : vector<32x1xf32> to vector<32x1xf32>
    %19 = vector.broadcast %18 : vector<32x1xf32> to vector<32x16xf32>
    %20 = vector.extract_strided_slice %9 {offsets = [0, 3], sizes = [32, 1], strides = [1, 1]} : vector<32x16xf32> to vector<32x1xf32>
    %21 = vector.shape_cast %20 : vector<32x1xf32> to vector<32x1xf32>
    %22 = vector.broadcast %21 : vector<32x1xf32> to vector<32x16xf32>
    %23 = vector.extract_strided_slice %9 {offsets = [0, 4], sizes = [32, 1], strides = [1, 1]} : vector<32x16xf32> to vector<32x1xf32>
    %24 = vector.shape_cast %23 : vector<32x1xf32> to vector<32x1xf32>
    %25 = vector.broadcast %24 : vector<32x1xf32> to vector<32x16xf32>
    %26 = vector.extract_strided_slice %9 {offsets = [0, 5], sizes = [32, 1], strides = [1, 1]} : vector<32x16xf32> to vector<32x1xf32>
    %27 = vector.shape_cast %26 : vector<32x1xf32> to vector<32x1xf32>
    %28 = vector.broadcast %27 : vector<32x1xf32> to vector<32x16xf32>
    %29 = vector.extract_strided_slice %9 {offsets = [0, 6], sizes = [32, 1], strides = [1, 1]} : vector<32x16xf32> to vector<32x1xf32>
    %30 = vector.shape_cast %29 : vector<32x1xf32> to vector<32x1xf32>
    %31 = vector.broadcast %30 : vector<32x1xf32> to vector<32x16xf32>
    %32 = vector.extract_strided_slice %9 {offsets = [0, 7], sizes = [32, 1], strides = [1, 1]} : vector<32x16xf32> to vector<32x1xf32>
    %33 = vector.shape_cast %32 : vector<32x1xf32> to vector<32x1xf32>
    %34 = vector.broadcast %33 : vector<32x1xf32> to vector<32x16xf32>
    %35 = vector.extract_strided_slice %9 {offsets = [0, 8], sizes = [32, 1], strides = [1, 1]} : vector<32x16xf32> to vector<32x1xf32>
    %36 = vector.shape_cast %35 : vector<32x1xf32> to vector<32x1xf32>
    %37 = vector.broadcast %36 : vector<32x1xf32> to vector<32x16xf32>
    %38 = vector.extract_strided_slice %9 {offsets = [0, 9], sizes = [32, 1], strides = [1, 1]} : vector<32x16xf32> to vector<32x1xf32>
    %39 = vector.shape_cast %38 : vector<32x1xf32> to vector<32x1xf32>
    %40 = vector.broadcast %39 : vector<32x1xf32> to vector<32x16xf32>
    %41 = vector.extract_strided_slice %9 {offsets = [0, 10], sizes = [32, 1], strides = [1, 1]} : vector<32x16xf32> to vector<32x1xf32>
    %42 = vector.shape_cast %41 : vector<32x1xf32> to vector<32x1xf32>
    %43 = vector.broadcast %42 : vector<32x1xf32> to vector<32x16xf32>
    %44 = vector.extract_strided_slice %9 {offsets = [0, 11], sizes = [32, 1], strides = [1, 1]} : vector<32x16xf32> to vector<32x1xf32>
    %45 = vector.shape_cast %44 : vector<32x1xf32> to vector<32x1xf32>
    %46 = vector.broadcast %45 : vector<32x1xf32> to vector<32x16xf32>
    %47 = vector.extract_strided_slice %9 {offsets = [0, 12], sizes = [32, 1], strides = [1, 1]} : vector<32x16xf32> to vector<32x1xf32>
    %48 = vector.shape_cast %47 : vector<32x1xf32> to vector<32x1xf32>
    %49 = vector.broadcast %48 : vector<32x1xf32> to vector<32x16xf32>
    %50 = vector.extract_strided_slice %9 {offsets = [0, 13], sizes = [32, 1], strides = [1, 1]} : vector<32x16xf32> to vector<32x1xf32>
    %51 = vector.shape_cast %50 : vector<32x1xf32> to vector<32x1xf32>
    %52 = vector.broadcast %51 : vector<32x1xf32> to vector<32x16xf32>
    %53 = vector.extract_strided_slice %9 {offsets = [0, 14], sizes = [32, 1], strides = [1, 1]} : vector<32x16xf32> to vector<32x1xf32>
    %54 = vector.shape_cast %53 : vector<32x1xf32> to vector<32x1xf32>
    %55 = vector.broadcast %54 : vector<32x1xf32> to vector<32x16xf32>
    %56 = vector.extract_strided_slice %9 {offsets = [0, 15], sizes = [32, 1], strides = [1, 1]} : vector<32x16xf32> to vector<32x1xf32>
    %57 = vector.shape_cast %56 : vector<32x1xf32> to vector<32x1xf32>
    %58 = vector.broadcast %57 : vector<32x1xf32> to vector<32x16xf32>
    %59 = tpu.concatenate %13, %16, %19, %22, %25, %28, %31, %34, %37, %40, %43, %46, %49, %52, %55, %58 in 1 : vector<32x16xf32>, vector<32x16xf32>, vector<32x16xf32>, vector<32x16xf32>, vector<32x16xf32>, vector<32x16xf32>, vector<32x16xf32>, vector<32x16xf32>, vector<32x16xf32>, vector<32x16xf32>, vector<32x16xf32>, vector<32x16xf32>, vector<32x16xf32>, vector<32x16xf32>, vector<32x16xf32>, vector<32x16xf32> -> vector<32x256xf32>
    %60 = tpu.concatenate %10, %10, %10, %10, %10, %10, %10, %10, %10, %10, %10, %10, %10, %10, %10, %10 in 1 : vector<32x16xf32>, vector<32x16xf32>, vector<32x16xf32>, vector<32x16xf32>, vector<32x16xf32>, vector<32x16xf32>, vector<32x16xf32>, vector<32x16xf32>, vector<32x16xf32>, vector<32x16xf32>, vector<32x16xf32>, vector<32x16xf32>, vector<32x16xf32>, vector<32x16xf32>, vector<32x16xf32>, vector<32x16xf32> -> vector<32x256xf32>
    %61 = arith.mulf %59, %60 : vector<32x256xf32>
    %c0_3 = arith.constant 0 : index
    %c0_4 = arith.constant 0 : index
    %62 = vector.load %arg2[%c0_3, %c0_4] : memref<32x256xf32, #tpu.memory_space<vmem>>, vector<32x256xf32>
    tpu.vector_store %arg2[%c0_3, %c0_4], %61 {strides = array<i32>} : memref<32x256xf32, #tpu.memory_space<vmem>>, vector<32x256xf32>,
    return
  }
  func.func @transform_0(%arg0: i32) -> (i32, i32) {
    %c0_i32 = arith.constant 0 : i32
    %c0_i32_0 = arith.constant 0 : i32
    return %arg0, %c0_i32 : i32, i32
  }
  func.func @transform_1(%arg0: i32) -> (i32, i32) {
    %c0_i32 = arith.constant 0 : i32
    %c0_i32_0 = arith.constant 0 : i32
    return %arg0, %c0_i32 : i32, i32
  }
}

</mosaic_0001>

<bundles_post_ra>
// kernel: tpu_custom_call.1
= control target key start
LH: loop header
LB: loop body
LE: loop exit
PB: predicated region body
PF: predicated region fallthrough
CT: control target
= control target key end

     0   :  { %6 = vsyncpa [#allocation3], 0  ;;  %s1261_s0 = inlined_call_operand.vmem [shape: f32[128,32], index: 0, kind: input, shape index: {}]   ;;  %s1262_s1 = inlined_call_operand.hbm [shape: f32[128,256], index: 1, kind: output, shape index: {}]  }
   0x1   :  { %8 = vsyncpa [#allocation3 + $0x1], 0  ;;  %s895_s6 = smov 0   ;;  %s897_s7 = smov 0  }
   0x2   :  { %s899_s8 = smov 0   ;;  %s901_s9 = smov 0  }
   0x3 LB: > { %s916_s10 = sadd.s32 4294967295, %s858_s9   ;;  %s678_s11 = sadd.s32 4294967294, %s858_s9   ;;  %s858_s9 = sphi %s901_s9, %s1268_s9   ;;  %s854_s8 = sphi %s899_s8, %s1267_s8   ;;  %s850_s7 = sphi %s897_s7, %s1266_s7   ;;  %s846_s6 = sphi %s895_s6, %s1265_s6  }
   0x4   : > { %s920_s12 = sadd.s32 1, %s858_s9   ;;  %s47_s13 = sadd.s32 1, %s854_s8 }
   0x5   : > { %s44_s14 = ssub.s32 %s858_s9, %s920_s12  ;;  %p57_p0 = scmp.ne.s32.totalorder %s854_s8, %s850_s7 }
   0x6   : > { %p45_p1 = scmp.eq.s32.totalorder %s44_s14, 0  ;;  %p58_p2 = scmp.eq.s32.totalorder %s916_s10, 3 }
   0x7   : > { %p63_p3 = scmp.ne.s32.totalorder %s850_s7, %s846_s6  ;;  %p64_p4 = scmp.eq.s32.totalorder %s678_s11, 3 }
   0x8   : > { %s931_s15 = scalar_select %p45_p1, %s854_s8, %s47_s13  }
   0x9   : > { %p933_p5 = por %p58_p2, %p57_p0  ;;  %p937_p6 = por %p64_p4, %p63_p3 }
   0xa   : > { %p681_p7 = scmp.ge.s32.totalorder %s858_s9, 1  ;;  %p91_p8 = scmp.lt.s32.totalorder %s858_s9, 5 }
   0xc   : > { %p92_p9 = pnand %p681_p7, %p91_p8 }
   0xd   : > { %s683_s18 = sshll.u32 (!%p92_p9), %s916_s10, 2  ;;  %v860_v0 = vmov (!%p92_p9), 0   ;;  %v861_v29 = vmov (!%p92_p9), 1   ;;  %v862_v30 = vmov (!%p92_p9), 2   ;;  %v863_v31 = vmov (!%p92_p9), 3   ;;  %s876_s23 = smov (!%p92_p9), 112  }
   0xe   : > { %95 = sbr.rel (%p92_p9) target bundleno = 415 (0x19f), region = 24  ;;  %757 = vset.pattern.permute.xlu1 (!%p92_p9), %v860_v0  ;;  %756 = vset.pattern.permute.xlu0 (!%p92_p9), %v860_v0  ;;  %p112_p10 = scmp.lt.s32.totalorder (!%p92_p9), %s683_s18, 15  ;;  %v864_v32 = vmov (!%p92_p9), 4   ;;  %v865_v33 = vmov (!%p92_p9), 5   ;;  %v866_v34 = vmov (!%p92_p9), 6   ;;  %v867_v35 = vmov (!%p92_p9), 7  }
   0xf   : > { %v868_v36 = vmov (!%p92_p9), 8   ;;  %v869_v37 = vmov (!%p92_p9), 9   ;;  %v870_v38 = vmov (!%p92_p9), 10   ;;  %v871_v39 = vmov (!%p92_p9), 11   ;;  %s877_s24 = smov (!%p92_p9), 16   ;;  %s878_s25 = smov (!%p92_p9), 32  }
  0x10   : > { %v872_v40 = vmov (!%p92_p9), 12   ;;  %v873_v41 = vmov (!%p92_p9), 13   ;;  %v874_v42 = vmov (!%p92_p9), 14   ;;  %v875_v43 = vmov (!%p92_p9), 15   ;;  %s879_s26 = smov (!%p92_p9), 48   ;;  %s880_s27 = smov (!%p92_p9), 64  }
  0x11   : > { %vm406_vm0 = vcmask (!%p92_p9), 130048   ;;  %vm411_vm1 = vcmask (!%p92_p9), 261120   ;;  %vm416_vm2 = vcmask (!%p92_p9), 392192   ;;  %s881_s28 = smov (!%p92_p9), 80   ;;  %vm421_vm3 = vcmask (!%p92_p9), 523264   ;;  %s882_s29 = smov (!%p92_p9), 96  }
  0x12   : > { %vm426_vm4 = vcmask (!%p92_p9), 654336   ;;  %vm431_vm5 = vcmask (!%p92_p9), 785408   ;;  %vm436_vm6 = vcmask (!%p92_p9), 916480   ;;  %s108_s30 = sand.u32 (!%p92_p9), 1, %s850_s7   ;;  %s692_s4 = sshll.u32 (!%p92_p9), %s916_s10, 10 }
  0x13   : > { %s682_s2 = sshll.u32 (!%p92_p9), %s108_s30, 6  ;;  %s1210_s14 = scalar_lea.hbm (!%p92_p9), %s1262_s1, %s692_s4 }
  0x14   : > { %s1174_s3 = scalar_lea.vmem (!%p92_p9), [#allocation2], %s682_s2  ;;  %s1219_s10 = scalar_lea.sflag (!%p92_p9), [#allocation3], %s108_s30 }
  0x15   : > { %s1270_s18 = smov (!%p112_p10, %s683_s18), 15  ;;  %s616_s5 = sshll.u32 %s1174_s3, 4  ;;  %s1213_s5 = int_to_ptr.vmem [resolvable:$true] %s616_s5 }
  0x16   : > { %s684_s19 = sshll.u32 %s1270_s18, 3  ;;  %s796_s18 = scalar_lea.vmem %s1213_s5, 1024 }
  0x17   : > { %s115_s22 = scalar_lea.vmem %s1261_s0, %s684_s19  ;;  %p797_p11 = scmp.ne.s32.totalorder %s1213_s5, %s796_s18 }
  0x18   : > { %v120_v1 = vld [vmem:[%s115_s22 + $0x10] sm:$0xff]  ;;  %v118_v2 = vld [vmem:[%s115_s22] sm:$0xff]  ;;  %v121_v3 = vld [vmem:[%s115_s22 + $0x18] sm:$0xff]  ;;  %s883_s19 = smov [#allocation2]  }
  0x19   : > { %v124_v4 = vmul.f32 %v120_v1, %v120_v1  ;;  %v122_v5 = vmul.f32 %v118_v2, %v118_v2  ;;  %v125_v6 = vmul.f32 %v121_v3, %v121_v3  ;;  %v119_v7 = vld [vmem:[%s115_s22 + $0x8] sm:$0xff]  ;;  %p798_p12 = pnand %p797_p11, %p933_p5  ;;  %s800_s20 = sshll.u32 %s883_s19, 4  ;;  %s801_s20 = int_to_ptr.vmem [resolvable:$false] %s800_s20 }
  0x1a   : > { %v123_v8 = vmul.f32 %v119_v7, %v119_v7  ;;  %s802_s21 = scalar_lea.vmem %s801_s20, 2048  ;;  %p803_p0 = scmp.lt.s32.totalorder %s1213_s5, %s801_s20 }
  0x1b   : > { %v128_v9 = vsub.f32 0.0, %v124_v4  ;;  %v126_v10 = vsub.f32 0.0, %v122_v5  ;;  %v129_v11 = vsub.f32 0.0, %v125_v6  ;;  %p799_p13 = pneg %p798_p12  ;;  %p804_p1 = scmp.lt.s32.totalorder %s802_s21, %s796_s18 }
  0x1c   : > { %v127_v12 = vsub.f32 0.0, %v123_v8 }
  0x1d   : > { %v132_v13 = vmul.f32 2.0, %v128_v9  ;;  %v130_v14 = vmul.f32 2.0, %v126_v10  ;;  %v133_v15 = vmul.f32 2.0, %v129_v11  ;;  %p805_p2 = por %p804_p1, %p803_p0 }
  0x1e   : > { %v131_v16 = vmul.f32 2.0, %v127_v12 }
  0x1f   : > { %v138_v17 = vmul.f32 1.442695, %v132_v13  ;;  %v134_v18 = vmul.f32 1.442695, %v130_v14  ;;  %v140_v19 = vmul.f32 1.442695, %v133_v15  ;;  %p806_p3 = pnand %p805_p2, %p799_p13 }
  0x20   : > { %v136_v20 = vmul.f32 1.442695, %v131_v16 }
  0x21   : > { %788 = vpow2.f32 %v138_v17 }
  0x22   : > { %790 = vpow2.f32 %v134_v18 }
  0x23   : > { %792 = vpow2.f32 %v140_v19 }
  0x24   : > { %794 = vpow2.f32 %v136_v20 }
  0x2b   : > { %v947_v21 = vpop.eup %788 }
  0x2c   : > { %v949_v22 = vpop.eup %790  ;;  %v952_v23 = vmul.f32 0.2, %v947_v21 }
  0x2d   : > { %v954_v24 = vpop.eup %792  ;;  %v957_v25 = vmul.f32 0.2, %v949_v22 }
  0x2e   : > { %v959_v26 = vpop.eup %794  ;;  %158 = vperm.xlu1 %757, %v952_v23   ;;  %v963_v27 = vmul.f32 0.2, %v954_v24 }
  0x2f   : > { %148 = vperm.xlu0 %756, %v957_v25   ;;  %v967_v28 = vmul.f32 0.2, %v959_v26 }
  0x32   : > { %163 = vperm.xlu1 %757, %v963_v27  }
  0x33   : > { %153 = vperm.xlu0 %756, %v967_v28  }
  0x36   : > { %759 = vset.pattern.permute.xlu1 %v861_v29 }
  0x37   : > { %758 = vset.pattern.permute.xlu0 %v861_v29  ;;  %171 = vperm.xlu1 %759, %v967_v28  }
  0x38   : > { %167 = vperm.xlu0 %758, %v957_v25  }
  0x3b   : > { %175 = vperm.xlu1 %759, %v952_v23  }
  0x3c   : > { %179 = vperm.xlu0 %758, %v963_v27  }
  0x3f   : > { %760 = vset.pattern.permute.xlu1 %v862_v30 }
  0x40   : > { %761 = vset.pattern.permute.xlu0 %v862_v30  ;;  %183 = vperm.xlu1 %760, %v957_v25  }
  0x41   : > { %187 = vperm.xlu0 %761, %v967_v28  }
  0x44   : > { %191 = vperm.xlu1 %760, %v952_v23  }
  0x45   : > { %762 = vset.pattern.permute.xlu0 %v863_v31 }
  0x46   : > { %199 = vperm.xlu0 %762, %v957_v25  }
  0x48   : > { %195 = vperm.xlu1 %760, %v963_v27  }
  0x4a   : > { %211 = vperm.xlu0 %762, %v963_v27  }
  0x4c   : > { %763 = vset.pattern.permute.xlu1 %v863_v31 }
  0x4d   : > { %203 = vperm.xlu1 %763, %v967_v28  }
  0x4e   : > { %765 = vset.pattern.permute.xlu0 %v864_v32 }
  0x4f   : > { %219 = vperm.xlu0 %765, %v967_v28  }
  0x51   : > { %207 = vperm.xlu1 %763, %v952_v23  }
  0x53   : > { %766 = vset.pattern.permute.xlu0 %v865_v33 }
  0x54   : > { %231 = vperm.xlu0 %766, %v957_v25  }
  0x55   : > { %764 = vset.pattern.permute.xlu1 %v864_v32 }
  0x56   : > { %215 = vperm.xlu1 %764, %v957_v25  }
  0x58   : > { %243 = vperm.xlu0 %766, %v963_v27  }
  0x5a   : > { %223 = vperm.xlu1 %764, %v952_v23  }
  0x5c   : > { %769 = vset.pattern.permute.xlu0 %v866_v34 }
  0x5d   : > { %251 = vperm.xlu0 %769, %v967_v28  }
  0x5e   : > { %227 = vperm.xlu1 %764, %v963_v27  }
  0x61   : > { %770 = vset.pattern.permute.xlu0 %v867_v35 }
  0x62   : > { %263 = vperm.xlu0 %770, %v957_v25   ;;  %767 = vset.pattern.permute.xlu1 %v865_v33 }
  0x63   : > { %235 = vperm.xlu1 %767, %v967_v28  }
  0x66   : > { %275 = vperm.xlu0 %770, %v963_v27  }
  0x67   : > { %239 = vperm.xlu1 %767, %v952_v23  }
  0x6a   : > { %773 = vset.pattern.permute.xlu0 %v868_v36 }
  0x6b   : > { %283 = vperm.xlu0 %773, %v967_v28   ;;  %768 = vset.pattern.permute.xlu1 %v866_v34 }
  0x6c   : > { %247 = vperm.xlu1 %768, %v957_v25  }
  0x6f   : > { %774 = vset.pattern.permute.xlu0 %v869_v37 }
  0x70   : > { %295 = vperm.xlu0 %774, %v957_v25   ;;  %255 = vperm.xlu1 %768, %v952_v23  }
  0x74   : > { %307 = vperm.xlu0 %774, %v963_v27   ;;  %259 = vperm.xlu1 %768, %v963_v27  }
  0x78   : > { %777 = vset.pattern.permute.xlu0 %v870_v38  ;;  %771 = vset.pattern.permute.xlu1 %v867_v35 }
  0x79   : > { %315 = vperm.xlu0 %777, %v967_v28   ;;  %267 = vperm.xlu1 %771, %v967_v28  }
  0x7d   : > { %778 = vset.pattern.permute.xlu0 %v871_v39  ;;  %271 = vperm.xlu1 %771, %v952_v23  }
  0x7e   : > { %327 = vperm.xlu0 %778, %v957_v25  }
  0x81   : > { %772 = vset.pattern.permute.xlu1 %v868_v36 }
  0x82   : > { %339 = vperm.xlu0 %778, %v963_v27   ;;  %279 = vperm.xlu1 %772, %v957_v25  }
  0x86   : > { %781 = vset.pattern.permute.xlu0 %v872_v40  ;;  %287 = vperm.xlu1 %772, %v952_v23  }
  0x87   : > { %347 = vperm.xlu0 %781, %v967_v28  }
  0x8a   : > { %291 = vperm.xlu1 %772, %v963_v27  }
  0x8b   : > { %782 = vset.pattern.permute.xlu0 %v873_v41 }
  0x8c   : > { %359 = vperm.xlu0 %782, %v957_v25  }
  0x8e   : > { %775 = vset.pattern.permute.xlu1 %v869_v37 }
  0x8f   : > { %299 = vperm.xlu1 %775, %v967_v28  }
  0x90   : > { %371 = vperm.xlu0 %782, %v963_v27  }
  0x93   : > { %303 = vperm.xlu1 %775, %v952_v23  }
  0x94   : > { %785 = vset.pattern.permute.xlu0 %v874_v42 }
  0x95   : > { %379 = vperm.xlu0 %785, %v967_v28  }
  0x97   : > { %776 = vset.pattern.permute.xlu1 %v870_v38 }
  0x98   : > { %311 = vperm.xlu1 %776, %v957_v25  }
  0x99   : > { %786 = vset.pattern.permute.xlu0 %v875_v43 }
  0x9a   : > { %391 = vperm.xlu0 %786, %v957_v25  }
  0x9c   : > { %319 = vperm.xlu1 %776, %v952_v23  }
  0x9e   : > { %403 = vperm.xlu0 %786, %v963_v27  }
  0xa0   : > { %323 = vperm.xlu1 %776, %v963_v27  }
  0xa2   : > { %475 = vrot.lane.b32.xlu0 %v959_v26, %s876_s23 }
  0xa4   : > { %779 = vset.pattern.permute.xlu1 %v871_v39 }
  0xa5   : > { %331 = vperm.xlu1 %779, %v967_v28  }
  0xa6   : > { %479 = vrot.lane.b32.xlu0 %v954_v24, %s876_s23 }
  0xa9   : > { %335 = vperm.xlu1 %779, %v952_v23  }
  0xaa   : > { %487 = vrot.lane.b32.xlu0 %v959_v26, %s877_s24 }
  0xad   : > { %v159_v44 = vpop.permute.xlu1 %158  ;;  %780 = vset.pattern.permute.xlu1 %v872_v40 }
  0xae   : > { %343 = vperm.xlu1 %780, %v957_v25   ;;  %v149_v45 = vpop.permute.xlu0 %148  ;;  %491 = vrot.lane.b32.xlu0 %v954_v24, %s877_s24 }
  0xb1   : > { %v164_v46 = vpop.permute.xlu1 %163 }
  0xb2   : > { %351 = vperm.xlu1 %780, %v952_v23   ;;  %v154_v47 = vpop.permute.xlu0 %153  ;;  %499 = vrot.lane.b32.xlu0 %v959_v26, %s878_s25 }
  0xb6   : > { %v172_v48 = vpop.permute.xlu1 %171  ;;  %355 = vperm.xlu1 %780, %v963_v27   ;;  %503 = vrot.lane.b32.xlu0 %v954_v24, %s878_s25 }
  0xb7   : > { %v168_v49 = vpop.permute.xlu0 %167  ;;  %v408_v54 = vsel %vm406_vm0, %v154_v47, %v172_v48 }
  0xb8   : > { %v407_v50 = vsel %vm406_vm0, %v149_v45, %v168_v49 }
  0xba   : > { %v176_v51 = vpop.permute.xlu1 %175  ;;  %783 = vset.pattern.permute.xlu1 %v873_v41  ;;  %511 = vrot.lane.b32.xlu0 %v959_v26, %s879_s26 }
  0xbb   : > { %v180_v52 = vpop.permute.xlu0 %179  ;;  %363 = vperm.xlu1 %783, %v967_v28   ;;  %v409_v5 = vsel %vm406_vm0, %v159_v44, %v176_v51 }
  0xbc   : > { %v410_v61 = vsel %vm406_vm0, %v164_v46, %v180_v52 }
  0xbe   : > { %515 = vrot.lane.b32.xlu0 %v954_v24, %s879_s26 }
  0xbf   : > { %367 = vperm.xlu1 %783, %v952_v23   ;;  %v184_v53 = vpop.permute.xlu1 %183 }
  0xc0   : > { %v412_v55 = vsel %vm411_vm1, %v407_v50, %v184_v53  ;;  %v188_v56 = vpop.permute.xlu0 %187 }
  0xc1   : > { %v413_v57 = vsel %vm411_vm1, %v408_v54, %v188_v56 }
  0xc2   : > { %523 = vrot.lane.b32.xlu0 %v959_v26, %s880_s27 }
  0xc3   : > { %784 = vset.pattern.permute.xlu1 %v874_v42  ;;  %v192_v58 = vpop.permute.xlu1 %191 }
  0xc4   : > { %375 = vperm.xlu1 %784, %v957_v25   ;;  %v414_v7 = vsel %vm411_vm1, %v409_v5, %v192_v58 }
  0xc5   : > { %v200_v59 = vpop.permute.xlu0 %199 }
  0xc6   : > { %v417_v60 = vsel %vm416_vm2, %v412_v55, %v200_v59  ;;  %527 = vrot.lane.b32.xlu0 %v954_v24, %s880_s27 }
  0xc7   : > { %v196_v62 = vpop.permute.xlu1 %195 }
  0xc8   : > { %v415_v63 = vsel %vm411_vm1, %v410_v61, %v196_v62  ;;  %383 = vperm.xlu1 %784, %v952_v23  }
  0xc9   : > { %v212_v0 = vpop.permute.xlu0 %211 }
  0xca   : > { %v420_v1 = vsel %vm416_vm2, %v415_v63, %v212_v0  ;;  %535 = vrot.lane.b32.xlu0 %v959_v26, %s881_s28 }
  0xcc   : > { %387 = vperm.xlu1 %784, %v963_v27   ;;  %v204_v2 = vpop.permute.xlu1 %203 }
  0xcd   : > { %v418_v3 = vsel %vm416_vm2, %v413_v57, %v204_v2 }
  0xce   : > { %v220_v4 = vpop.permute.xlu0 %219  ;;  %539 = vrot.lane.b32.xlu0 %v954_v24, %s881_s28 }
  0xcf   : > { %v423_v6 = vsel %vm421_vm3, %v418_v3, %v220_v4 }
  0xd0   : > { %787 = vset.pattern.permute.xlu1 %v875_v43  ;;  %v208_v8 = vpop.permute.xlu1 %207 }
  0xd1   : > { %v419_v9 = vsel %vm416_vm2, %v414_v7, %v208_v8  ;;  %395 = vperm.xlu1 %787, %v967_v28  }
  0xd2   : > { %547 = vrot.lane.b32.xlu0 %v959_v26, %s882_s29 }
  0xd3   : > { %v232_v10 = vpop.permute.xlu0 %231 }
  0xd5   : > { %399 = vperm.xlu1 %787, %v952_v23   ;;  %v216_v11 = vpop.permute.xlu1 %215 }
  0xd6   : > { %v422_v12 = vsel %vm421_vm3, %v417_v60, %v216_v11  ;;  %551 = vrot.lane.b32.xlu0 %v954_v24, %s882_s29 }
  0xd7   : > { %v427_v13 = vsel %vm426_vm4, %v422_v12, %v232_v10  ;;  %v244_v14 = vpop.permute.xlu0 %243 }
  0xd9   : > { %v224_v15 = vpop.permute.xlu1 %223  ;;  %473 = vrot.lane.b32.xlu1 %v949_v22, %s876_s23 }
  0xda   : > { %v424_v16 = vsel %vm421_vm3, %v419_v9, %v224_v15 }
  0xdc   : > { %v252_v17 = vpop.permute.xlu0 %251 }
  0xdd   : > { %v228_v18 = vpop.permute.xlu1 %227  ;;  %477 = vrot.lane.b32.xlu1 %v947_v21, %s876_s23 }
  0xde   : > { %v425_v19 = vsel %vm421_vm3, %v420_v1, %v228_v18 }
  0xdf   : > { %v430_v20 = vsel %vm426_vm4, %v425_v19, %v244_v14 }
  0xe1   : > { %v264_v23 = vpop.permute.xlu0 %263  ;;  %485 = vrot.lane.b32.xlu1 %v949_v22, %s877_s24 }
  0xe2   : > { %v236_v25 = vpop.permute.xlu1 %235 }
  0xe3   : > { %v428_v27 = vsel %vm426_vm4, %v423_v6, %v236_v25 }
  0xe4   : > { %v433_v28 = vsel %vm431_vm5, %v428_v27, %v252_v17 }
  0xe5   : > { %v276_v29 = vpop.permute.xlu0 %275  ;;  %489 = vrot.lane.b32.xlu1 %v947_v21, %s877_s24 }
  0xe6   : > { %v240_v30 = vpop.permute.xlu1 %239 }
  0xe7   : > { %v429_v31 = vsel %vm426_vm4, %v424_v16, %v240_v30 }
  0xe9   : > { %497 = vrot.lane.b32.xlu1 %v949_v22, %s878_s25 }
  0xea   : > { %v284_v32 = vpop.permute.xlu0 %283 }
  0xeb   : > { %v248_v33 = vpop.permute.xlu1 %247 }
  0xec   : > { %v432_v34 = vsel %vm431_vm5, %v427_v13, %v248_v33 }
  0xed   : > { %501 = vrot.lane.b32.xlu1 %v947_v21, %s878_s25  ;;  %v1096_v35 = vsel %vm436_vm6, %v432_v34, %v264_v23 }
  0xef   : > { %v256_v36 = vpop.permute.xlu1 %255  ;;  %v296_v37 = vpop.permute.xlu0 %295 }
  0xf0   : > { %v434_v38 = vsel %vm431_vm5, %v429_v31, %v256_v36 }
  0xf1   : > { %509 = vrot.lane.b32.xlu1 %v949_v22, %s879_s26 }
  0xf3   : > { %v260_v39 = vpop.permute.xlu1 %259  ;;  %v308_v40 = vpop.permute.xlu0 %307 }
  0xf4   : > { %v435_v41 = vsel %vm431_vm5, %v430_v20, %v260_v39 }
  0xf5   : > { %513 = vrot.lane.b32.xlu1 %v947_v21, %s879_s26  ;;  %v1105_v42 = vsel %vm436_vm6, %v435_v41, %v276_v29 }
  0xf8   : > { %v268_v43 = vpop.permute.xlu1 %267  ;;  %v316_v44 = vpop.permute.xlu0 %315 }
  0xf9   : > { %v1108_v45 = vsel %vm436_vm6, %v433_v28, %v268_v43  ;;  %521 = vrot.lane.b32.xlu1 %v949_v22, %s880_s27 }
  0xfc   : > { %v272_v46 = vpop.permute.xlu1 %271 }
  0xfd   : > { %v1113_v47 = vsel %vm436_vm6, %v434_v38, %v272_v46  ;;  %v328_v48 = vpop.permute.xlu0 %327  ;;  %525 = vrot.lane.b32.xlu1 %v947_v21, %s880_s27 }
 0x101   : > { %v280_v49 = vpop.permute.xlu1 %279  ;;  %v340_v50 = vpop.permute.xlu0 %339  ;;  %533 = vrot.lane.b32.xlu1 %v949_v22, %s881_s28 }
 0x102   : > { %v441_v51 = vsel %vm406_vm0, %v280_v49, %v296_v37 }
 0x105   : > { %v288_v52 = vpop.permute.xlu1 %287  ;;  %537 = vrot.lane.b32.xlu1 %v947_v21, %s881_s28 }
 0x106   : > { %v348_v53 = vpop.permute.xlu0 %347 }
 0x109   : > { %v292_v54 = vpop.permute.xlu1 %291  ;;  %545 = vrot.lane.b32.xlu1 %v949_v22, %s882_s29 }
 0x10a   : > { %v444_v6 = vsel %vm406_vm0, %v292_v54, %v308_v40 }
 0x10b   : > { %v360_v55 = vpop.permute.xlu0 %359 }
 0x10d   : > { %549 = vrot.lane.b32.xlu1 %v947_v21, %s882_s29 }
 0x10e   : > { %v300_v56 = vpop.permute.xlu1 %299 }
 0x10f   : > { %v442_v57 = vsel %vm406_vm0, %v284_v32, %v300_v56  ;;  %v372_v58 = vpop.permute.xlu0 %371 }
 0x110   : > { %v446_v59 = vsel %vm411_vm1, %v442_v57, %v316_v44 }
 0x112   : > { %v304_v60 = vpop.permute.xlu1 %303 }
 0x113   : > { %v443_v61 = vsel %vm406_vm0, %v288_v52, %v304_v60 }
 0x114   : > { %v380_v62 = vpop.permute.xlu0 %379 }
 0x117   : > { %v312_v63 = vpop.permute.xlu1 %311 }
 0x118   : > { %v445_v0 = vsel %vm411_vm1, %v441_v51, %v312_v63 }
 0x119   : > { %v392_v1 = vpop.permute.xlu0 %391  ;;  %v449_v2 = vsel %vm416_vm2, %v445_v0, %v328_v48 }
 0x11b   : > { %v320_v3 = vpop.permute.xlu1 %319 }
 0x11c   : > { %v447_v4 = vsel %vm411_vm1, %v443_v61, %v320_v3 }
 0x11d   : > { %v1132_v5 = vpop.permute.xlu0 %403 }
 0x11f   : > { %v324_v7 = vpop.permute.xlu1 %323 }
 0x120   : > { %v448_v8 = vsel %vm411_vm1, %v444_v6, %v324_v7 }
 0x121   : > { %v476_v9 = vpop.permute.xlu0 %475  ;;  %v452_v10 = vsel %vm416_vm2, %v448_v8, %v340_v50 }
 0x122   : > { %v558_v39 = vsel %vm406_vm0, %v476_v9, %v959_v26 }
 0x124   : > { %v332_v11 = vpop.permute.xlu1 %331 }
 0x125   : > { %v450_v12 = vsel %vm416_vm2, %v446_v59, %v332_v11  ;;  %v480_v13 = vpop.permute.xlu0 %479 }
 0x126   : > { %v454_v14 = vsel %vm421_vm3, %v450_v12, %v348_v53  ;;  %v560_v44 = vsel %vm406_vm0, %v480_v13, %v954_v24 }
 0x128   : > { %v336_v15 = vpop.permute.xlu1 %335 }
 0x129   : > { %v451_v16 = vsel %vm416_vm2, %v447_v4, %v336_v15  ;;  %v488_v17 = vpop.permute.xlu0 %487 }
 0x12a   : > { %v562_v41 = vsel %vm411_vm1, %v558_v39, %v488_v17 }
 0x12d   : > { %v492_v18 = vpop.permute.xlu0 %491  ;;  %v344_v19 = vpop.permute.xlu1 %343 }
 0x12e   : > { %v453_v20 = vsel %vm421_vm3, %v449_v2, %v344_v19  ;;  %v564_v51 = vsel %vm411_vm1, %v560_v44, %v492_v18 }
 0x12f   : > { %v457_v23 = vsel %vm426_vm4, %v453_v20, %v360_v55 }
 0x131   : > { %v500_v25 = vpop.permute.xlu0 %499  ;;  %v352_v27 = vpop.permute.xlu1 %351 }
 0x132   : > { %v455_v28 = vsel %vm421_vm3, %v451_v16, %v352_v27  ;;  %v566_v50 = vsel %vm416_vm2, %v562_v41, %v500_v25 }
 0x135   : > { %v504_v29 = vpop.permute.xlu0 %503  ;;  %v356_v30 = vpop.permute.xlu1 %355 }
 0x136   : > { %v456_v31 = vsel %vm421_vm3, %v452_v10, %v356_v30  ;;  %v568_v55 = vsel %vm416_vm2, %v564_v51, %v504_v29 }
 0x137   : > { %v460_v32 = vsel %vm426_vm4, %v456_v31, %v372_v58 }
 0x139   : > { %v512_v33 = vpop.permute.xlu0 %511 }
 0x13a   : > { %v364_v34 = vpop.permute.xlu1 %363  ;;  %v570_v53 = vsel %vm421_vm3, %v566_v50, %v512_v33 }
 0x13b   : > { %v458_v57 = vsel %vm426_vm4, %v454_v14, %v364_v34 }
 0x13c   : > { %v462_v0 = vsel %vm431_vm5, %v458_v57, %v380_v62 }
 0x13d   : > { %v516_v36 = vpop.permute.xlu0 %515 }
 0x13e   : > { %v368_v37 = vpop.permute.xlu1 %367  ;;  %v572_v58 = vsel %vm421_vm3, %v568_v55, %v516_v36 }
 0x13f   : > { %v459_v38 = vsel %vm426_vm4, %v455_v28, %v368_v37 }
 0x141   : > { %v524_v40 = vpop.permute.xlu0 %523 }
 0x142   : > { %v574_v56 = vsel %vm426_vm4, %v570_v53, %v524_v40 }
 0x143   : > { %v376_v43 = vpop.permute.xlu1 %375 }
 0x144   : > { %v461_v46 = vsel %vm431_vm5, %v457_v23, %v376_v43 }
 0x145   : > { %v528_v48 = vpop.permute.xlu0 %527  ;;  %v465_v49 = vsel %vm436_vm6, %v461_v46, %v392_v1 }
 0x146   : > { %v576_v61 = vsel %vm426_vm4, %v572_v58, %v528_v48 }
 0x147   : > { %v384_v52 = vpop.permute.xlu1 %383 }
 0x148   : > { %v1156_v26 = vsel %vm431_vm5, %v459_v38, %v384_v52 }
 0x149   : > { %v536_v54 = vpop.permute.xlu0 %535 }
 0x14a   : > { %v578_v60 = vsel %vm431_vm5, %v574_v56, %v536_v54 }
 0x14b   : > { %v388_v24 = vpop.permute.xlu1 %387 }
 0x14c   : > { %v464_v4 = vsel %vm431_vm5, %v460_v32, %v388_v24 }
 0x14d   : > { %v540_v59 = vpop.permute.xlu0 %539  ;;  %v468_v10 = vsel %vm436_vm6, %v464_v4, %v1132_v5 }
 0x14e   : > { %v580_v6 = vsel %vm431_vm5, %v576_v61, %v540_v59 }
 0x150   : > { %v396_v63 = vpop.permute.xlu1 %395 }
 0x151   : > { %v466_v1 = vsel %vm436_vm6, %v462_v0, %v396_v63  ;;  %v548_v2 = vpop.permute.xlu0 %547 }
 0x152   : > { %v582_v3 = vsel %vm436_vm6, %v578_v60, %v548_v2 }
 0x153   : > { %v587_v7 = vmul.f32 %v582_v3, %v1108_v45  ;;  %v588_v8 = vmul.f32 %v582_v3, %v466_v1 }
 0x154   : > { %v400_v9 = vpop.permute.xlu1 %399 }
 0x155   : > { %595 = vst [vmem:[%s1174_s3 + $0x10] sm:$0xff] %v587_v7  ;;  %596 = vst [vmem:[%s1174_s3 + $0x18] sm:$0xff] %v588_v8  ;;  %v552_v62 = vpop.permute.xlu0 %551  ;;  %v467_v44 = vsel %vm436_vm6, %v1156_v26, %v400_v9 }
 0x156   : > { %v584_v11 = vsel %vm436_vm6, %v580_v6, %v552_v62 }
 0x157   : > { %v591_v12 = vmul.f32 %v584_v11, %v1105_v42  ;;  %v592_v13 = vmul.f32 %v584_v11, %v468_v10 }
 0x158   : > { %v474_v45 = vpop.permute.xlu1 %473 }
 0x159   : > { %599 = vst [vmem:[%s1174_s3 + $0x30] sm:$0xff] %v591_v12  ;;  %600 = vst [vmem:[%s1174_s3 + $0x38] sm:$0xff] %v592_v13  ;;  %v557_v5 = vsel %vm406_vm0, %v474_v45, %v949_v22 }
 0x15c   : > { %v478_v14 = vpop.permute.xlu1 %477 }
 0x15d   : > { %v559_v31 = vsel %vm406_vm0, %v478_v14, %v947_v21 }
 0x160   : > { %v486_v15 = vpop.permute.xlu1 %485 }
 0x161   : > { %v561_v42 = vsel %vm411_vm1, %v557_v5, %v486_v15 }
 0x164   : > { %v490_v16 = vpop.permute.xlu1 %489 }
 0x165   : > { %v563_v33 = vsel %vm411_vm1, %v559_v31, %v490_v16 }
 0x168   : > { %v498_v17 = vpop.permute.xlu1 %497 }
 0x169   : > { %v565_v29 = vsel %vm416_vm2, %v561_v42, %v498_v17 }
 0x16c   : > { %v502_v18 = vpop.permute.xlu1 %501 }
 0x16d   : > { %v567_v36 = vsel %vm416_vm2, %v563_v33, %v502_v18 }
 0x170   : > { %v510_v19 = vpop.permute.xlu1 %509 }
 0x171   : > { %v569_v30 = vsel %vm421_vm3, %v565_v29, %v510_v19 }
 0x174   : > { %v514_v20 = vpop.permute.xlu1 %513 }
 0x175   : > { %v571_v38 = vsel %vm421_vm3, %v567_v36, %v514_v20 }
 0x178   : > { %v522_v23 = vpop.permute.xlu1 %521 }
 0x179   : > { %v573_v32 = vsel %vm426_vm4, %v569_v30, %v522_v23 }
 0x17c   : > { %v526_v25 = vpop.permute.xlu1 %525 }
 0x17d   : > { %v575_v21 = vsel %vm426_vm4, %v571_v38, %v526_v25 }
 0x180   : > { %v534_v27 = vpop.permute.xlu1 %533 }
 0x181   : > { %v577_v34 = vsel %vm431_vm5, %v573_v32, %v534_v27 }
 0x184   : > { %v538_v28 = vpop.permute.xlu1 %537 }
 0x185   : > { %v579_v41 = vsel %vm431_vm5, %v575_v21, %v538_v28 }
 0x188   : > { %v546_v22 = vpop.permute.xlu1 %545 }
 0x189   : > { %v581_v37 = vsel %vm436_vm6, %v577_v34, %v546_v22 }
 0x18a   : > { %v585_v39 = vmul.f32 %v581_v37, %v1096_v35  ;;  %v586_v40 = vmul.f32 %v581_v37, %v465_v49 }
 0x18c   : > { %593 = vst [vmem:[%s1174_s3] sm:$0xff] %v585_v39  ;;  %594 = vst [vmem:[%s1174_s3 + $0x8] sm:$0xff] %v586_v40  ;;  %v550_v43 = vpop.permute.xlu1 %549 }
 0x18d   : > { %v583_v46 = vsel %vm436_vm6, %v579_v41, %v550_v43 }
 0x18e   : > { %v589_v35 = vmul.f32 %v583_v46, %v1113_v47  ;;  %v590_v48 = vmul.f32 %v583_v46, %v467_v44 }
 0x190   : > { %597 = vst [vmem:[%s1174_s3 + $0x20] sm:$0xff] %v589_v35  ;;  %598 = vst [vmem:[%s1174_s3 + $0x28] sm:$0xff] %v590_v48 }
 0x191   : > { %809 = shalt.err (!%p806_p3)
}
 0x192   : > { %s810_s22 = scalar_lea.hbm %s1210_s14, 1024  ;;  %s814_s26 = scalar_lea.hbm %s1262_s1, 4096 }
 0x193   : > { %p811_p4 = scmp.ne.s32.totalorder %s1210_s14, %s810_s22  ;;  %p815_p9 = scmp.lt.u32.totalorder %s1210_s14, %s1262_s1 }
 0x194   : > { %p816_p10 = scmp.lt.u32.totalorder %s814_s26, %s810_s22  ;;  %p818_p12 = scmp.lt.u32.totalorder %s810_s22, %s1210_s14 }
 0x195   : > { %p812_p7 = pnand %p811_p4, %p933_p5 }
 0x196   : > { %p817_p11 = por %p816_p10, %p815_p9 }
 0x197   : > { %p813_p8 = pneg %p812_p7 }
 0x198   : > { %p819_p13 = por %p818_p12, %p817_p11 }
 0x19a   : > { %p820_p0 = pnand %p819_p13, %p813_p8 }
 0x19c   : > { %823 = shalt.err (!%p820_p0)
}
 0x19d   : > { %s884_s29 = smov 256  }
 0x19e   : > { %693 = dma.vmem_to_hbm [thread:$0]  (%p933_p5), %s1213_s5, 1024, %s1210_s14, %s1219_s10, %s884_s29, %s884_s29, %s877_s24  }
 0x19f PF: > { %p699_p1 = scmp.ge.s32.totalorder %s858_s9, 2  ;;  %s631_s30 = sand.u32 1, %s846_s6  }
 0x1a0   : > { %s632_s2 = scalar_lea.sflag [#allocation3], %s631_s30 }
 0x1a1   : > { %p696_p2 = pnand %p699_p1, %p937_p6 }
 0x1a3   : > { %841 = dma.done.wait (!%p696_p2), %s632_s2, 1024  }
 0x1a4   : > { %843 = vsyncadd (!%p696_p2), %s632_s2, 4294966272  ;;  %p11_p3 = scmp.ge.s32.totalorder %s920_s12, 6   ;;  %s1265_s6 = smov %s850_s7 }
 0x1a5   : > { %s1266_s7 = smov %s854_s8  ;;  %s1267_s8 = smov %s931_s15 }
 0x1a6   : > { %s1268_s9 = smov %s920_s12  ;;  %13 = sbr.rel (!%p11_p3) target bundleno = 3 (0x3), region = 59 }
 0x1ad   :  { %637 = vsyncpa [#allocation3], 1 }
 0x1ae   :  { %639 = vsyncpa [#allocation3 + $0x1], 1 }

</bundles_post_ra>
